<compile_context>
chip_gen: v5e
topology: v5e:2x2
jax: 0.10.0
libtpu: 0.0.40
codegen_flags: <defaults>
</compile_context>

<pallas_src>
import jax
import jax.numpy as jnp
from jax.experimental import pallas as pl
from jax.experimental.pallas import tpu as pltpu


def _make_mel_weights(height: int, min_value: float) -> jnp.ndarray:
    """Deterministic weight table, identical math to the torch __init__."""
    f = (jnp.arange(height, dtype=jnp.float32)[:, None] + 20.0) * 20000.0   # (H, 1)
    mel = 1127.01048 * jnp.log(f / 700.0 + 1.0)
    n_mel = 1.0 - mel / jnp.max(mel)
    w = (n_mel + min_value) / jnp.max(n_mel + min_value)
    return w  # (H, 1) float32


def _mel_mse_kernel(x_ref, t_ref, w_ref, acc_ref):
    # x_ref, t_ref: (TM, HW) lane-dense tile of flattened (B*C, H*W) rows
    # w_ref:        (1, HW)  pre-broadcast mel weights
    # acc_ref:      (TM, HW) f32 accumulator, resident across the inner axis
    @pl.when(pl.program_id(1) == 0)
    def _():
        acc_ref[...] = jnp.zeros_like(acc_ref)

    d = x_ref[...].astype(jnp.float32) - t_ref[...].astype(jnp.float32)
    acc_ref[...] += d * d * w_ref[...]          # (1, HW) broadcasts over TM rows


def _round_up(x: int, m: int) -> int:
    return ((x + m - 1) // m) * m


def mel_weighted_mse_loss(inp: jnp.ndarray,
                          target: jnp.ndarray,
                          min_value: float = 0.3) -> jnp.ndarray:
    """inp/target: (B, C, H, W). Returns scalar mean of mel-weighted squared error."""
    B, C, H, W = inp.shape
    BC, HW = B * C, H * W
    itemsize = jnp.dtype(inp.dtype).itemsize

    weights = _make_mel_weights(H, min_value)                       # (H, 1)
    w_flat = jnp.broadcast_to(weights, (H, W)).reshape(1, HW)       # lane-dense weights

    x = inp.reshape(BC, HW)
    t = target.reshape(BC, HW)

    # Row tile: ~2 MiB per input block, multiple of 8 sublanes, never larger
    # than the (padded) number of rows.  Fits 2 inputs x 2 buffers + f32
    # accumulator + weights comfortably inside a 32 MiB scoped-VMEM budget
    # on every TPU generation.
    target_block_bytes = 2 * 1024 * 1024
    tm = max(8, (target_block_bytes // max(HW * itemsize, 1)) // 8 * 8)
    tm = min(tm, _round_up(BC, 8))

    n_blocks = -(-BC // tm)
    if n_blocks >= 2:
        num_par = 2                       # two TensorCores on v7x; harmless on v5e/v6e
        n_inner = -(-n_blocks // num_par)
    else:
        num_par, n_inner = 1, 1
    n_blocks = num_par * n_inner
    bc_pad = n_blocks * tm

    if bc_pad != BC:
        pad = ((0, bc_pad - BC), (0, 0))
        x = jnp.pad(x, pad)               # zero rows contribute nothing to the sum
        t = jnp.pad(t, pad)

    flops = 4 * bc_pad * HW               # sub + 2 mul + accumulate-add
    bytes_accessed = (2 * bc_pad * HW * itemsize      # stream x and t
                      + num_par * tm * HW * 4          # partial-sum writeback
                      + HW * 4)                        # weights

    partials = pl.pallas_call(
        _mel_mse_kernel,
        out_shape=jax.ShapeDtypeStruct((num_par * tm, HW), jnp.float32),
        grid_spec=pltpu.PrefetchScalarGridSpec(
            num_scalar_prefetch=0,
            grid=(num_par, n_inner),
            in_specs=[
                pl.BlockSpec((tm, HW), lambda p, i, ni=n_inner: (p * ni + i, 0)),
                pl.BlockSpec((tm, HW), lambda p, i, ni=n_inner: (p * ni + i, 0)),
                pl.BlockSpec((1, HW), lambda p, i: (0, 0)),
            ],
            out_specs=pl.BlockSpec((tm, HW), lambda p, i: (p, 0)),
        ),
        compiler_params=pltpu.CompilerParams(
            dimension_semantics=("parallel", "arbitrary"),
            vmem_limit_bytes=32 * 1024 * 1024,
        ),
        cost_estimate=pl.CostEstimate(
            flops=flops, transcendentals=0, bytes_accessed=bytes_accessed),
    )(x, t, w_flat)

    total = jnp.sum(partials, dtype=jnp.float32)     # tiny final reduce in plain JAX
    n_elems = jnp.float32(B * C * H * W)
    return (total / n_elems).astype(inp.dtype)


def _reference(inp, target, min_value=0.3):
    w = _make_mel_weights(inp.shape[2], min_value)
    loss = (inp - target) ** 2 * w   # (H,1) broadcasts against (B,C,H,W)
    return jnp.mean(loss)


if __name__ == "__main__":
    key = jax.random.PRNGKey(0)
    k1, k2 = jax.random.split(key)

    B, C, H, W = 2, 4, 16, 16   # H plays the role of `height` in the module
    x = jax.random.normal(k1, (B, C, H, W), dtype=jnp.float32)
    y = jax.random.normal(k2, (B, C, H, W), dtype=jnp.float32)

    out = mel_weighted_mse_loss(x, y, min_value=0.3)
    out = jax.block_until_ready(out)

    ref = _reference(x, y, min_value=0.3)
    assert jnp.allclose(out, ref, rtol=1e-5, atol=1e-6), (out, ref)

    print("KERNEL_OK")
</pallas_src>

<mosaic_0001>
module attributes {stable_mosaic.version = 11 : i64} {
  func.func @_mel_mse_kernel(%arg0: i32, %arg1: i32, %arg2: memref<8x256xf32, #tpu.memory_space<vmem>>, %arg3: memref<8x256xf32, #tpu.memory_space<vmem>>, %arg4: memref<1x256xf32, #tpu.memory_space<vmem>>, %arg5: memref<8x256xf32, #tpu.memory_space<vmem>>) attributes {dimension_semantics = [#tpu.dimension_semantics<parallel>, #tpu.dimension_semantics<arbitrary>], iteration_bounds = array<i64: 1, 1>, scalar_prefetch = 0 : i64, scratch_operands = 0 : i64, tpu.core_type = #tpu.core_type<tc>, window_params = [{transform_indices = @transform_0, window_bounds = array<i64: 8, 256>}, {transform_indices = @transform_1, window_bounds = array<i64: 8, 256>}, {pipeline_mode = #tpu.pipeline_mode<synchronous>, transform_indices = @transform_2, window_bounds = array<i64: 1, 256>}, {transform_indices = @transform_3, window_bounds = array<i64: 8, 256>}]} {
    %c0_i32 = arith.constant 0 : i32
    %0 = arith.cmpi eq, %arg1, %c0_i32 : i32
    %1 = arith.extui %0 : i1 to i32
    %c0_i32_0 = arith.constant 0 : i32
    %2 = arith.cmpi ne, %1, %c0_i32_0 : i32
    scf.if %2 {
      %cst = arith.constant 0.000000e+00 : f32
      %13 = vector.broadcast %cst : f32 to vector<8x256xf32>
      %c0_10 = arith.constant 0 : index
      %c0_11 = arith.constant 0 : index
      %14 = vector.load %arg5[%c0_10, %c0_11] : memref<8x256xf32, #tpu.memory_space<vmem>>, vector<8x256xf32>
      tpu.vector_store %arg5[%c0_10, %c0_11], %13 {strides = array<i32>} : memref<8x256xf32, #tpu.memory_space<vmem>>, vector<8x256xf32>,
    } else {
    }
    %c0 = arith.constant 0 : index
    %c0_1 = arith.constant 0 : index
    %3 = vector.load %arg2[%c0, %c0_1] : memref<8x256xf32, #tpu.memory_space<vmem>>, vector<8x256xf32>
    %c0_2 = arith.constant 0 : index
    %c0_3 = arith.constant 0 : index
    %4 = vector.load %arg3[%c0_2, %c0_3] : memref<8x256xf32, #tpu.memory_space<vmem>>, vector<8x256xf32>
    %5 = arith.subf %3, %4 : vector<8x256xf32>
    %c0_4 = arith.constant 0 : index
    %c0_5 = arith.constant 0 : index
    %6 = vector.load %arg5[%c0_4, %c0_5] : memref<8x256xf32, #tpu.memory_space<vmem>>, vector<8x256xf32>
    %7 = arith.mulf %5, %5 : vector<8x256xf32>
    %c0_6 = arith.constant 0 : index
    %c0_7 = arith.constant 0 : index
    %8 = vector.load %arg4[%c0_6, %c0_7] : memref<1x256xf32, #tpu.memory_space<vmem>>, vector<1x256xf32>
    %9 = vector.broadcast %8 : vector<1x256xf32> to vector<8x256xf32>
    %10 = arith.mulf %7, %9 : vector<8x256xf32>
    %11 = arith.addf %6, %10 : vector<8x256xf32>
    %c0_8 = arith.constant 0 : index
    %c0_9 = arith.constant 0 : index
    %12 = vector.load %arg5[%c0_8, %c0_9] : memref<8x256xf32, #tpu.memory_space<vmem>>, vector<8x256xf32>
    tpu.vector_store %arg5[%c0_8, %c0_9], %11 {strides = array<i32>} : memref<8x256xf32, #tpu.memory_space<vmem>>, vector<8x256xf32>,
    return
  }
  func.func @transform_0(%arg0: i32, %arg1: i32) -> (i32, i32) {
    %c1_i32 = arith.constant 1 : i32
    %0 = arith.muli %arg0, %c1_i32 : i32
    %1 = arith.addi %0, %arg1 : i32
    %c0_i32 = arith.constant 0 : i32
    %c0_i32_0 = arith.constant 0 : i32
    return %1, %c0_i32 : i32, i32
  }
  func.func @transform_1(%arg0: i32, %arg1: i32) -> (i32, i32) {
    %c1_i32 = arith.constant 1 : i32
    %0 = arith.muli %arg0, %c1_i32 : i32
    %1 = arith.addi %0, %arg1 : i32
    %c0_i32 = arith.constant 0 : i32
    %c0_i32_0 = arith.constant 0 : i32
    return %1, %c0_i32 : i32, i32
  }
  func.func @transform_2(%arg0: i32, %arg1: i32) -> (i32, i32) {
    %c0_i32 = arith.constant 0 : i32
    %c0_i32_0 = arith.constant 0 : i32
    %c0_i32_1 = arith.constant 0 : i32
    return %c0_i32, %c0_i32_0 : i32, i32
  }
  func.func @transform_3(%arg0: i32, %arg1: i32) -> (i32, i32) {
    %c0_i32 = arith.constant 0 : i32
    %c0_i32_0 = arith.constant 0 : i32
    return %arg0, %c0_i32 : i32, i32
  }
}

</mosaic_0001>

<bundles_post_ra>
// kernel: tpu_custom_call.1
= control target key start
LH: loop header
LB: loop body
LE: loop exit
PB: predicated region body
PF: predicated region fallthrough
CT: control target
= control target key end

     0   :  { %8 = vsyncpa [#allocation3], 0  ;;  %s255_s0 = inlined_call_operand.hbm [shape: f32[8,256], index: 0, kind: input, shape index: {}]   ;;  %s256_s1 = inlined_call_operand.hbm [shape: f32[8,256], index: 1, kind: input, shape index: {}]   ;;  %s257_s2 = inlined_call_operand.hbm [shape: f32[1,256], index: 2, kind: input, shape index: {}]   ;;  %s258_s3 = inlined_call_operand.hbm [shape: f32[8,256], index: 3, kind: output, shape index: {}]  }
   0x1   :  { %9 = vsyncpa [#allocation6], 0  ;;  %s35_s14 = sshll.u32 %s256_s1, 4  ;;  %s36_s14 = int_to_ptr.hbm [resolvable:$true] %s35_s14 }
   0x2   :  { %10 = vsyncpa [#allocation4], 0  ;;  %s219_s15 = smov [#allocation5]   ;;  %s20_s19 = sshll.u32 %s255_s0, 4  ;;  %s21_s19 = int_to_ptr.hbm [resolvable:$true] %s20_s19 }
   0x3   :  { %s37_s16 = sshll.u32 %s219_s15, 4  ;;  %s220_s20 = smov [#allocation2]   ;;  %s38_s16 = int_to_ptr.vmem [resolvable:$true] %s37_s16 }
   0x4   :  { %40 = dma.hbm_to_vmem [thread:$0]  %s36_s14, 256, %s38_s16, [#allocation6]  }
   0x5   :  { %s22_s21 = sshll.u32 %s220_s20, 4  ;;  %s46_s24 = sshll.u32 %s257_s2, 4  ;;  %s23_s21 = int_to_ptr.vmem [resolvable:$true] %s22_s21  ;;  %s47_s24 = int_to_ptr.hbm [resolvable:$true] %s46_s24 }
   0x6   :  { %25 = dma.hbm_to_vmem [thread:$0]  %s21_s19, 256, %s23_s21, [#allocation3]  }
   0x7   :  { %s221_s1 = smov [#allocation7]  }
   0x8   :  { %s48_s25 = sshll.u32 %s221_s1, 4  ;;  %s49_s25 = int_to_ptr.vmem [resolvable:$true] %s48_s25 }
   0x9   :  { %51 = dma.hbm_to_vmem [thread:$0]  %s47_s24, 32, %s49_s25, [#allocation6]  }
   0xa   :  { %213 = dma.done.wait [#allocation3], 256  }
   0xb   :  { %214 = vsyncadd [#allocation3], 4294967040 }
   0xc   :  { %215 = dma.done.wait [#allocation6], 288  }
   0xd   :  { %216 = vsyncadd [#allocation6], 4294967008  ;;  %v72_v0 = vld [vmem:[#allocation2] sm:$0xff]  ;;  %v74_v1 = vld [vmem:[#allocation5] sm:$0xff]  ;;  %s222_s0 = smov [#allocation8]   ;;  %s101_s28 = sshll.u32 %s258_s3, 4  ;;  %s102_s28 = int_to_ptr.hbm [resolvable:$true] %s101_s28 }
   0xe   :  { %v82_v2 = vld [vmem:[#allocation7] sm:$0x3]  ;;  %v76_v3 = vsub.f32 %v72_v0, %v74_v1  ;;  %v73_v5 = vld [vmem:[#allocation2 + $0x8] sm:$0xff]  ;;  %v75_v6 = vld [vmem:[#allocation5 + $0x8] sm:$0xff]  ;;  %s99_s2 = sshll.u32 %s222_s0, 4  ;;  %s100_s2 = int_to_ptr.vmem [resolvable:$true] %s99_s2 }
   0xf   :  { %v84_v4 = vperm.slane %v82_v2, 0  ;;  %v77_v7 = vsub.f32 %v73_v5, %v75_v6  ;;  %v85_v8 = vperm.slane %v82_v2, 1 }
  0x10   :  { %v80_v9 = vmul.f32 %v76_v3, %v76_v3 }
  0x11   :  { %v81_v10 = vmul.f32 %v77_v7, %v77_v7 }
  0x12   :  { %v88_v11 = vmul.f32 %v84_v4, %v80_v9 }
  0x13   :  { %v89_v12 = vmul.f32 %v85_v8, %v81_v10 }
  0x14   :  { %92 = vst [vmem:[#allocation8] sm:$0xff] %v88_v11 }
  0x15   :  { %93 = vst [vmem:[#allocation8 + $0x8] sm:$0xff] %v89_v12 }
  0x16   :  { %104 = dma.vmem_to_hbm [thread:$0]  %s100_s2, 256, %s102_s28, [#allocation4]  }
  0x17   :  { %217 = dma.done.wait [#allocation4], 256  }
  0x18   :  { %218 = vsyncadd [#allocation4], 4294967040 }
  0x19   :  { %109 = vsyncpa [#allocation3], 1 }
  0x1a   :  { %110 = vsyncpa [#allocation6], 1 }
  0x1b   :  { %111 = vsyncpa [#allocation4], 1 }

</bundles_post_ra>
